<compile_context>
chip_gen: v5e
topology: v5e:2x2
jax: 0.10.0
libtpu: 0.0.40
codegen_flags: <defaults>
</compile_context>

<pallas_src>
import functools

import jax
import jax.numpy as jnp
import numpy as np
from jax.experimental import pallas as pl
from jax.experimental.pallas import tpu as pltpu


def _ce_ls_kernel(logits_ref, targets_ref, out_ref, *, num_classes, epsilon,
                  size_average, T, n_true):
    # logits_ref: (tile_n, C) float, targets_ref: (tile_n, 1) int32
    tile_n, c = logits_ref.shape
    x = logits_ref[...].astype(jnp.float32) * (1.0 / T)

    # log-sum-exp pieces along the class (lane) axis.
    m = jnp.max(x, axis=1, keepdims=True)                         # (tile_n, 1)
    shifted = x - m                                               # (tile_n, C)
    lse = jnp.log(jnp.sum(jnp.exp(shifted), axis=1, keepdims=True))
    row_sum = jnp.sum(shifted, axis=1, keepdims=True)

    # shifted value at the target class: iota compare + masked lane reduce.
    class_ids = jax.lax.broadcasted_iota(jnp.int32, (tile_n, c), 1)
    tgt = targets_ref[...]                                        # (tile_n, 1)
    shifted_t = jnp.sum(jnp.where(class_ids == tgt, shifted, 0.0),
                        axis=1, keepdims=True)

    # loss_i = lse_i - (1-eps)*shifted[i, t_i] - (eps/C)*sum_j shifted[i, j]
    loss = (lse
            - (1.0 - epsilon) * shifted_t
            - (epsilon / num_classes) * row_sum)                  # (tile_n, 1)

    if size_average:
        # Mask rows added by batch padding (batch padded to multiple of tile_n).
        row0 = pl.program_id(0) * tile_n
        row_ids = row0 + jax.lax.broadcasted_iota(jnp.int32, (tile_n, 1), 0)
        partial = jnp.sum(jnp.where(row_ids < n_true, loss, 0.0))

        @pl.when(pl.program_id(0) == 0)
        def _():
            out_ref[0, 0] = jnp.float32(0.0)

        out_ref[0, 0] += partial

        @pl.when(pl.program_id(0) == pl.num_programs(0) - 1)
        def _():
            out_ref[0, 0] = out_ref[0, 0] * (1.0 / n_true)
    else:
        out_ref[...] = loss


def _pick_tile_n(n, c, itemsize):
    """Largest batch tile whose logits buffer stays ~<=8 MiB (safe on v7x)."""
    budget = 8 * 1024 * 1024
    rows = budget // max(c * itemsize, 1)
    rows = max(8, min(1024, (rows // 8) * 8))
    n_pad8 = -(-n // 8) * 8
    return min(rows, n_pad8)


def cross_entropy_label_smooth(logits, targets, num_classes, *, epsilon=0.1,
                               size_average=True, T=1.0, tile_n=None):
    """Pallas equivalent of CrossEntropyLabelSmooth.forward(inputs, targets, T)."""
    n, c = logits.shape
    assert c == num_classes
    # TODO(synk): for vocab-scale num_classes, additionally tile the class axis
    # with an online (flash-attention-style) log-sum-exp instead of one full-C block.

    if tile_n is None:
        tile_n = _pick_tile_n(n, c, jnp.dtype(logits.dtype).itemsize)
    assert tile_n % 8 == 0

    n_pad = pl.cdiv(n, tile_n) * tile_n
    targets_2d = targets.reshape(n, 1).astype(jnp.int32)
    if n_pad != n:
        logits = jnp.pad(logits, ((0, n_pad - n), (0, 0)))
        targets_2d = jnp.pad(targets_2d, ((0, n_pad - n), (0, 0)))
    grid = (n_pad // tile_n,)

    kernel = functools.partial(
        _ce_ls_kernel,
        num_classes=num_classes,
        epsilon=epsilon,
        size_average=size_average,
        T=T,
        n_true=n,
    )

    in_specs = [
        pl.BlockSpec((tile_n, c), lambda i: (i, 0)),   # logits tile (VMEM)
        pl.BlockSpec((tile_n, 1), lambda i: (i, 0)),   # targets tile (VMEM)
    ]

    if size_average:
        # Scalar accumulator resident in SMEM across the (sequential) grid.
        out_shape = jax.ShapeDtypeStruct((1, 1), jnp.float32)
        out_specs = pl.BlockSpec((1, 1), lambda i: (0, 0),
                                 memory_space=pltpu.SMEM)
        semantics = ("arbitrary",)
    else:
        # Per-sample losses; disjoint blocks => batch axis can run in parallel
        # across TensorCores on v7x.
        out_shape = jax.ShapeDtypeStruct((n_pad, 1), jnp.float32)
        out_specs = pl.BlockSpec((tile_n, 1), lambda i: (i, 0))
        semantics = ("parallel",)

    out = pl.pallas_call(
        kernel,
        grid=grid,
        in_specs=in_specs,
        out_specs=out_specs,
        out_shape=out_shape,
        compiler_params=pltpu.CompilerParams(
            dimension_semantics=semantics,
            vmem_limit_bytes=32 * 1024 * 1024,
        ),
    )(logits, targets_2d)

    if size_average:
        return out[0, 0]       # scalar, like the PyTorch 0-d tensor
    return out[:n, 0]          # (N,) per-sample losses (padding sliced off)


def _reference(logits, targets, num_classes, epsilon=0.1, size_average=True,
               T=1.0):
    x = logits.astype(jnp.float32) / T
    log_probs = jax.nn.log_softmax(x, axis=1)
    onehot = jax.nn.one_hot(targets, num_classes, dtype=jnp.float32)
    smoothed = (1.0 - epsilon) * onehot + epsilon / num_classes
    if size_average:
        return (-smoothed * log_probs).mean(0).sum()
    return (-smoothed * log_probs).sum(1)


if __name__ == "__main__":
    num_classes = 32
    epsilon = 0.1
    T = 2.0

    key = jax.random.PRNGKey(0)
    k1, k2, k3, k4 = jax.random.split(key, 4)

    # Case 1: small single-tile problem (batch=8, C=32).
    logits = jax.random.normal(k1, (8, num_classes), dtype=jnp.float32)
    targets = jax.random.randint(k2, (8,), 0, num_classes, dtype=jnp.int32)

    loss = cross_entropy_label_smooth(logits, targets, num_classes,
                                      epsilon=epsilon, size_average=True, T=T)
    loss = jax.block_until_ready(loss)
    np.testing.assert_allclose(
        np.asarray(loss),
        np.asarray(_reference(logits, targets, num_classes, epsilon, True, T)),
        rtol=1e-5, atol=1e-5)

    loss_vec = cross_entropy_label_smooth(logits, targets, num_classes,
                                          epsilon=epsilon, size_average=False,
                                          T=T)
    loss_vec = jax.block_until_ready(loss_vec)
    np.testing.assert_allclose(
        np.asarray(loss_vec),
        np.asarray(_reference(logits, targets, num_classes, epsilon, False, T)),
        rtol=1e-5, atol=1e-5)

    # Case 2: multi-step grid with batch padding (batch=20, tile_n=8 -> 3 grid
    # steps, 4 padded rows masked) to exercise the pipelined / accumulator path.
    logits2 = jax.random.normal(k3, (20, num_classes), dtype=jnp.float32)
    targets2 = jax.random.randint(k4, (20,), 0, num_classes, dtype=jnp.int32)

    loss2 = cross_entropy_label_smooth(logits2, targets2, num_classes,
                                       epsilon=epsilon, size_average=True, T=T,
                                       tile_n=8)
    loss2 = jax.block_until_ready(loss2)
    np.testing.assert_allclose(
        np.asarray(loss2),
        np.asarray(_reference(logits2, targets2, num_classes, epsilon, True, T)),
        rtol=1e-5, atol=1e-5)

    loss_vec2 = cross_entropy_label_smooth(logits2, targets2, num_classes,
                                           epsilon=epsilon, size_average=False,
                                           T=T, tile_n=8)
    loss_vec2 = jax.block_until_ready(loss_vec2)
    np.testing.assert_allclose(
        np.asarray(loss_vec2),
        np.asarray(_reference(logits2, targets2, num_classes, epsilon, False, T)),
        rtol=1e-5, atol=1e-5)

    print("KERNEL_OK")
</pallas_src>

<mosaic_0001>
module attributes {stable_mosaic.version = 11 : i64} {
  func.func @_ce_ls_kernel(%arg0: i32, %arg1: memref<8x32xf32, #tpu.memory_space<vmem>>, %arg2: memref<8x1xi32, #tpu.memory_space<vmem>>, %arg3: memref<1x1xf32, #tpu.memory_space<smem>>) attributes {dimension_semantics = [#tpu.dimension_semantics<arbitrary>], iteration_bounds = array<i64: 1>, scalar_prefetch = 0 : i64, scratch_operands = 0 : i64, tpu.core_type = #tpu.core_type<tc>, window_params = [{transform_indices = @transform_0, window_bounds = array<i64: 8, 32>}, {transform_indices = @transform_1, window_bounds = array<i64: 8, 1>}, {transform_indices = @transform_2, window_bounds = array<i64: 1, 1>}]} {
    %c0 = arith.constant 0 : index
    %c0_0 = arith.constant 0 : index
    %0 = vector.load %arg1[%c0, %c0_0] : memref<8x32xf32, #tpu.memory_space<vmem>>, vector<8x32xf32>
    %cst = arith.constant 5.000000e-01 : f32
    %1 = vector.broadcast %cst : f32 to vector<8x32xf32>
    %2 = arith.mulf %0, %1 : vector<8x32xf32>
    %cst_1 = arith.constant dense<0xFF800000> : vector<8xf32>
    %3 = vector.multi_reduction <maximumf>, %2, %cst_1 [1] : vector<8x32xf32> to vector<8xf32>
    %4 = vector.shape_cast %3 : vector<8xf32> to vector<8x1xf32>
    %5 = vector.broadcast %4 : vector<8x1xf32> to vector<8x32xf32>
    %6 = arith.subf %2, %5 : vector<8x32xf32>
    %7 = math.exp %6 : vector<8x32xf32>
    %cst_2 = arith.constant dense<0.000000e+00> : vector<8xf32>
    %8 = vector.multi_reduction <add>, %7, %cst_2 [1] : vector<8x32xf32> to vector<8xf32>
    %9 = vector.shape_cast %8 : vector<8xf32> to vector<8x1xf32>
    %10 = math.log %9 : vector<8x1xf32>
    %cst_3 = arith.constant dense<0.000000e+00> : vector<8xf32>
    %11 = vector.multi_reduction <add>, %6, %cst_3 [1] : vector<8x32xf32> to vector<8xf32>
    %12 = vector.shape_cast %11 : vector<8xf32> to vector<8x1xf32>
    %13 = tpu.iota {dimensions = array<i32: 1>} : vector<8x32xi32>
    %c0_4 = arith.constant 0 : index
    %c0_5 = arith.constant 0 : index
    %14 = vector.load %arg2[%c0_4, %c0_5] : memref<8x1xi32, #tpu.memory_space<vmem>>, vector<8x1xi32>
    %15 = vector.broadcast %14 : vector<8x1xi32> to vector<8x32xi32>
    %16 = arith.cmpi eq, %13, %15 : vector<8x32xi32>
    %cst_6 = arith.constant 0.000000e+00 : f32
    %17 = vector.broadcast %cst_6 : f32 to vector<8x32xf32>
    %18 = arith.select %16, %6, %17 : vector<8x32xi1>, vector<8x32xf32>
    %cst_7 = arith.constant dense<0.000000e+00> : vector<8xf32>
    %19 = vector.multi_reduction <add>, %18, %cst_7 [1] : vector<8x32xf32> to vector<8xf32>
    %20 = vector.shape_cast %19 : vector<8xf32> to vector<8x1xf32>
    %cst_8 = arith.constant 0.899999976 : f32
    %21 = vector.broadcast %cst_8 : f32 to vector<8x1xf32>
    %22 = arith.mulf %21, %20 : vector<8x1xf32>
    %23 = arith.subf %10, %22 : vector<8x1xf32>
    %cst_9 = arith.constant 3.125000e-03 : f32
    %24 = vector.broadcast %cst_9 : f32 to vector<8x1xf32>
    %25 = arith.mulf %24, %12 : vector<8x1xf32>
    %26 = arith.subf %23, %25 : vector<8x1xf32>
    %c8_i32 = arith.constant 8 : i32
    %27 = arith.muli %arg0, %c8_i32 : i32
    %28 = tpu.iota {dimensions = array<i32: 0>} : vector<8x1xi32>
    %29 = vector.broadcast %27 : i32 to vector<8x1xi32>
    %30 = arith.addi %29, %28 : vector<8x1xi32>
    %c8_i32_10 = arith.constant 8 : i32
    %31 = vector.broadcast %c8_i32_10 : i32 to vector<8x1xi32>
    %32 = arith.cmpi slt, %30, %31 : vector<8x1xi32>
    %cst_11 = arith.constant 0.000000e+00 : f32
    %33 = vector.broadcast %cst_11 : f32 to vector<8x1xf32>
    %34 = arith.select %32, %26, %33 : vector<8x1xi1>, vector<8x1xf32>
    %35 = vector.shape_cast %34 : vector<8x1xf32> to vector<1x8x1xf32>
    %cst_12 = arith.constant dense<0.000000e+00> : vector<1xf32>
    %36 = vector.multi_reduction <add>, %35, %cst_12 [1, 2] : vector<1x8x1xf32> to vector<1xf32>
    %37 = vector.shape_cast %36 : vector<1xf32> to vector<1x1x1xf32>
    %38 = vector.extract %37[0, 0, 0] : f32 from vector<1x1x1xf32>
    %c0_i32 = arith.constant 0 : i32
    %39 = arith.cmpi eq, %arg0, %c0_i32 : i32
    %40 = arith.extui %39 : i1 to i32
    %c0_i32_13 = arith.constant 0 : i32
    %41 = arith.cmpi ne, %40, %c0_i32_13 : i32
    scf.if %41 {
      %cst_20 = arith.constant 0.000000e+00 : f32
      %c0_21 = arith.constant 0 : index
      %c0_22 = arith.constant 0 : index
      %48 = memref.load %arg3[%c0_21, %c0_22] : memref<1x1xf32, #tpu.memory_space<smem>>
      memref.store %cst_20, %arg3[%c0_21, %c0_22] : memref<1x1xf32, #tpu.memory_space<smem>>
    } else {
    }
    %c0_14 = arith.constant 0 : index
    %c0_15 = arith.constant 0 : index
    %42 = memref.load %arg3[%c0_14, %c0_15] : memref<1x1xf32, #tpu.memory_space<smem>>
    %43 = arith.addf %42, %38 : f32
    %c0_16 = arith.constant 0 : index
    %c0_17 = arith.constant 0 : index
    %44 = memref.load %arg3[%c0_16, %c0_17] : memref<1x1xf32, #tpu.memory_space<smem>>
    memref.store %43, %arg3[%c0_16, %c0_17] : memref<1x1xf32, #tpu.memory_space<smem>>
    %c0_i32_18 = arith.constant 0 : i32
    %45 = arith.cmpi eq, %arg0, %c0_i32_18 : i32
    %46 = arith.extui %45 : i1 to i32
    %c0_i32_19 = arith.constant 0 : i32
    %47 = arith.cmpi ne, %46, %c0_i32_19 : i32
    scf.if %47 {
      %c0_20 = arith.constant 0 : index
      %c0_21 = arith.constant 0 : index
      %48 = memref.load %arg3[%c0_20, %c0_21] : memref<1x1xf32, #tpu.memory_space<smem>>
      %cst_22 = arith.constant 1.250000e-01 : f32
      %49 = arith.mulf %48, %cst_22 : f32
      %c0_23 = arith.constant 0 : index
      %c0_24 = arith.constant 0 : index
      %50 = memref.load %arg3[%c0_23, %c0_24] : memref<1x1xf32, #tpu.memory_space<smem>>
      memref.store %49, %arg3[%c0_23, %c0_24] : memref<1x1xf32, #tpu.memory_space<smem>>
    } else {
    }
    return
  }
  func.func @transform_0(%arg0: i32) -> (i32, i32) {
    %c0_i32 = arith.constant 0 : i32
    %c0_i32_0 = arith.constant 0 : i32
    return %arg0, %c0_i32 : i32, i32
  }
  func.func @transform_1(%arg0: i32) -> (i32, i32) {
    %c0_i32 = arith.constant 0 : i32
    %c0_i32_0 = arith.constant 0 : i32
    return %arg0, %c0_i32 : i32, i32
  }
  func.func @transform_2(%arg0: i32) -> (i32, i32) {
    %c0_i32 = arith.constant 0 : i32
    %c0_i32_0 = arith.constant 0 : i32
    %c0_i32_1 = arith.constant 0 : i32
    return %c0_i32, %c0_i32_0 : i32, i32
  }
}

</mosaic_0001>

<bundles_post_ra>
// kernel: tpu_custom_call.1
= control target key start
LH: loop header
LB: loop body
LE: loop exit
PB: predicated region body
PF: predicated region fallthrough
CT: control target
= control target key end

     0   :  { %vm14_vm0 = vcmask 261120   ;;  %s147_s0 = inlined_call_operand.vmem [shape: f32[8,32], index: 0, kind: input, shape index: {}]   ;;  %s148_s1 = inlined_call_operand.vmem [shape: s32[8,1], index: 1, kind: input, shape index: {}]   ;;  %s149_s2 = inlined_call_operand.hbm [shape: f32[1,1], index: 2, kind: output, shape index: {}]  }
   0x1   :  { %v12_v0 = vld [vmem:[%s147_s0] sm:$0xff] }
   0x2   :  { %7 = vsyncpa [#allocation3], 0  ;;  %v13_v1 = vmul.f32 0.5, %v12_v0  ;;  %v117_v2 = vmov 0   ;;  %v31_v4 = vld [vmem:[%s148_s1] sm:$0xff]  ;;  %v29_v11 = vlaneseq  ;;  %vm51_vm2 = vcmask 7168  }
   0x3   :  { %98 = vset.pattern.permute.xlu0 %v117_v2  ;;  %s83_s13 = sshll.u32 %s149_s2, 4  ;;  %s118_s16 = smov [#allocation2]   ;;  %s84_s13 = int_to_ptr.hbm [resolvable:$true] %s83_s13 }
   0x4   :  { %v15_v3 = vsel %vm14_vm0, %v13_v1, -inf  ;;  %v30_v12 = vand.u32 127, %v29_v11 }
   0x5   :  { %16 = vmax.xlane.f32.xlu0 %v15_v3 }
  0x19   :  { %33 = vperm.xlu0 %98, %v31_v4  }
  0x78   :  { %v17_v5 = vpop.xlane.xlu0 %16 }
  0x79   :  { %v18_v6 = vsub.f32 %v13_v1, %v17_v5 }
  0x7b   :  { %v19_v7 = vmul.f32 1.442695, %v18_v6  ;;  %v26_v8 = vsel %vm14_vm0, %v18_v6, 0.0 }
  0x7c   :  { %27 = vadd.xlane.f32.xlu2 %v26_v8 }
  0x7d   :  { %99 = vpow2.f32 %v19_v7 }
  0x83   :  { %v100_v9 = vpop.eup %99 }
  0x84   :  { %v21_v10 = vsel %vm14_vm0, %v100_v9, 0.0 }
  0x85   :  { %22 = vadd.xlane.f32.xlu1 %v21_v10 }
  0x8b   :  { %v34_v13 = vpop.permute.xlu0 %33 }
  0x8c   :  { %vm35_vm1 = vcmp.eq.s32.totalorder %v30_v12, %v34_v13 }
  0x8d   :  { %v36_v14 = vsel %vm35_vm1, %v18_v6, 0.0 }
  0x8e   :  { %v37_v15 = vsel %vm14_vm0, %v36_v14, 0.0 }
  0x8f   :  { %38 = vadd.xlane.f32.xlu1 %v37_v15 }
  0xef   :  { %v28_v18 = vpop.xlane.xlu2 %27 }
  0xf0   :  { %v42_v22 = vmul.f32 0.003125, %v28_v18 }
  0xf8   :  { %v23_v16 = vpop.xlane.xlu1 %22 }
  0xf9   :  { %101 = vlog2.f32 %v23_v16 }
  0xff   :  { %v102_v17 = vpop.eup %101 }
 0x100   :  { %v25_v20 = vmul.f32 0.6931472, %v102_v17 }
 0x102   :  { %v39_v19 = vpop.xlane.xlu1 %38 }
 0x103   :  { %v40_v21 = vmul.f32 0.9, %v39_v19 }
 0x105   :  { %v41_v23 = vsub.f32 %v25_v20, %v40_v21 }
 0x107   :  { %v43_v24 = vsub.f32 %v41_v23, %v42_v22 }
 0x109   :  { %v52_v25 = vsel %vm51_vm2, %v43_v24, 0.0 }
 0x10a   :  { %53 = vadd.xlane.f32.xlu2 %v52_v25 }
 0x17d   :  { %v54_v26 = vpop.xlane.xlu2 %53 }
 0x17e   :  { %v55_v27 = vrot.slane %v54_v26, 4 }
 0x180   :  { %v56_v28 = vadd.f32 %v55_v27, %v54_v26 }
 0x182   :  { %v57_v29 = vrot.slane %v56_v28, 2 }
 0x184   :  { %v58_v30 = vadd.f32 %v57_v29, %v56_v28 }
 0x186   :  { %v59_v31 = vrot.slane %v58_v30, 1 }
 0x188   :  { %v60_v32 = vadd.f32 %v59_v31, %v58_v30 }
 0x18a   :  { %93 = vpush %v60_v32 }
 0x1bb   :  { %s94_s14 = spop %93 }
 0x1bc   :  { %s76_s15 = smul.f32 0.125, %s94_s14 }
 0x1be   :  { %77 = sst [smem:[#allocation2]] %s76_s15 }
 0x1bf   :  { %86 = dma.smem_to_hbm %s118_s16, 16, %s84_s13, [#allocation3]  }
 0x1c0   :  { %115 = dma.done.wait [#allocation3], 16  }
 0x1c1   :  { %116 = vsyncadd [#allocation3], 4294967280 }
 0x1c2   :  { %91 = sfence }
 0x1c3   :  { %92 = vsyncpa [#allocation3], 1 }

</bundles_post_ra>
